<compile_context>
chip_gen: v7x
topology: tpu7x:2x2x1
jax: 0.10.0
libtpu: 0.0.40
codegen_flags: <defaults>
</compile_context>

<pallas_src>
import math

import jax
import jax.numpy as jnp
from jax.experimental import pallas as pl
from jax.experimental.pallas import tpu as pltpu


_LANE = 128                        # TPU lane width (last-dim granule)
_MAX_LANES = 8192                  # cap lane width (32 KiB/row for f32)
_MIN_BLOCK_BYTES = 512 * 1024      # below this, HBM BW utilization craters
_SMALL_BYTES = 1 * 1024 * 1024     # "small tensor": single full-extent block


# ----------------------------------------------------------------------------
# Pallas kernel: tiled lane-dense identity copy (the only data movement a
# materializing .view() could ever need).
# ----------------------------------------------------------------------------
def _copy_kernel(x_ref, o_ref):
    o_ref[...] = x_ref[...]


_VMEM_CAPACITY = None


def _vmem_capacity_bytes() -> int:
    """Per-core VMEM capacity, queried once; conservative fallback = v7x."""
    global _VMEM_CAPACITY
    if _VMEM_CAPACITY is None:
        try:
            _VMEM_CAPACITY = int(pltpu.get_tpu_info().vmem_capacity_bytes)
        except Exception:
            _VMEM_CAPACITY = 64 * 1024 * 1024   # v7x per-TC (smallest)
    return _VMEM_CAPACITY


def _block_bytes_cap() -> int:
    # 4 live buffers (double-buffered input + output) must fit with headroom:
    # v7x (64 MiB VMEM) -> 8 MiB blocks, v5e/v6e (128 MiB) -> 16 MiB blocks.
    return min(16 << 20, max(_MIN_BLOCK_BYTES, _vmem_capacity_bytes() // 8))


def _widest_lanes(numel: int) -> int:
    """Widest lane count (multiple of 128, <= _MAX_LANES) dividing numel."""
    for m in range(_MAX_LANES // _LANE, 0, -1):
        if numel % (m * _LANE) == 0:
            return m * _LANE
    return _LANE   # unreachable when numel % _LANE == 0


def _tile_plan(numel: int, itemsize: int, block_bytes_cap: int):
    """Return (rows, lanes, block_rows) for a lane-dense tiled copy, or None."""
    if numel == 0 or numel % _LANE != 0:
        return None
    total_bytes = numel * itemsize
    min_sub = max(8, 32 // max(itemsize, 1))      # f32: 8, bf16: 16, int8: 32

    # Small tensors (kernel explicitly forced): one full-extent block.
    # block dims == array dims is always a legal tiling.
    if total_bytes <= _SMALL_BYTES:
        lanes = _widest_lanes(numel)
        rows = numel // lanes
        return rows, lanes, rows

    # Pipelined plan: >= 2 grid steps (>= 4 once the tensor exceeds ~2 MiB)
    # so the double-buffered DMA pipeline + v7x megacore sharding engage.
    min_steps = 4 if total_bytes >= (2 << 20) else 2
    best = None                                    # (block_bytes, lanes, block_rows)
    for m in range(_MAX_LANES // _LANE, 0, -1):    # widest lane-dense slab first
        lanes = m * _LANE
        if numel % lanes:
            continue
        rows = numel // lanes
        row_bytes = lanes * itemsize
        max_rows = block_bytes_cap // row_bytes
        if max_rows < min_sub or rows < min_steps * min_sub:
            continue
        g_lo = max(min_steps, -(-rows // max_rows))     # ceil(rows / max_rows)
        g_hi = min(rows // min_sub, g_lo + 4096)        # bounded divisor search
        for g in range(g_lo, g_hi + 1):
            if rows % g:
                continue
            block_rows = rows // g
            if block_rows * row_bytes < _MIN_BLOCK_BYTES:
                break                       # blocks only shrink as g grows
            if block_rows % min_sub:
                continue
            bb = block_rows * row_bytes
            if best is None or bb > best[0]:
                best = (bb, lanes, block_rows)
            break                           # largest block for this lane width
    if best is not None:
        _, lanes, block_rows = best
        return numel // lanes, lanes, block_rows

    # Degenerate factorization (e.g. rows = 8 * large_prime): no >= 512 KiB
    # split exists.  A single full-extent block beats 4-8 KiB tiles if it fits
    # the VMEM budget; otherwise punt to the metadata reshape.
    lanes = _widest_lanes(numel)
    rows = numel // lanes
    if rows * lanes * itemsize <= block_bytes_cap:
        return rows, lanes, rows
    return None


def _pallas_copy_2d(x2d: jax.Array, block_rows: int, *, donate: bool = False):
    """Copy an (R, C) array (C multiple of 128, R % block_rows == 0)."""
    rows, lanes = x2d.shape
    assert rows % block_rows == 0
    itemsize = jnp.dtype(x2d.dtype).itemsize
    grid = (rows // block_rows,)
    # 2 double-buffered input buffers + 2 output buffers, plus headroom for
    # Mosaic internal scratch.  Never request all of physical VMEM.
    footprint = 4 * block_rows * lanes * itemsize
    vmem_limit = min(max(16 << 20, footprint + (8 << 20)),
                     (_vmem_capacity_bytes() * 3) // 4)
    kwargs = {}
    if donate:
        # Identity copy => output may reuse the input HBM buffer; halves peak
        # HBM footprint for large tensors.  Opt-in (eager callers that keep
        # using the original array should leave this off).
        kwargs["input_output_aliases"] = {0: 0}
    return pl.pallas_call(
        _copy_kernel,
        out_shape=jax.ShapeDtypeStruct((rows, lanes), x2d.dtype),
        grid=grid,
        in_specs=[pl.BlockSpec((block_rows, lanes), lambda i: (i, 0))],
        out_specs=pl.BlockSpec((block_rows, lanes), lambda i: (i, 0)),
        compiler_params=pltpu.CompilerParams(
            dimension_semantics=("parallel",),   # megacore sharding on v7x
            vmem_limit_bytes=vmem_limit,
        ),
        **kwargs,
    )(x2d)


# ----------------------------------------------------------------------------
# Module equivalent.
# ----------------------------------------------------------------------------
class Reshape:
    """JAX/Pallas equivalent of the PyTorch Reshape(nn.Module).

    forward(x) == x.view(*shape).  By default this is a metadata-only
    jnp.reshape (exactly what torch .view() is on a contiguous tensor — zero
    HBM traffic).  Pass force_materialize=True to run the lane-dense Pallas
    identity-copy kernel and materialize a fresh buffer instead.
    """

    def __init__(self, *args, force_materialize: bool = False,
                 donate: bool = False):
        if len(args) == 1 and isinstance(args[0], (tuple, list)):
            args = tuple(args[0])
        self.shape = tuple(args)
        self.force_materialize = force_materialize
        self.donate = donate

    def _resolve_shape(self, numel: int):
        shape = list(self.shape)
        neg = [i for i, s in enumerate(shape) if s == -1]
        if len(neg) > 1:
            raise ValueError("only one dimension may be -1")
        if neg:
            known = math.prod(s for s in shape if s != -1)
            if known == 0 or numel % known != 0:
                raise ValueError(
                    f"cannot view array of size {numel} as shape {self.shape}")
            shape[neg[0]] = numel // known
        if math.prod(shape) != numel:
            raise ValueError(
                f"cannot view array of size {numel} as shape {self.shape}")
        return tuple(shape)

    def __call__(self, x: jax.Array) -> jax.Array:
        out_shape = self._resolve_shape(x.size)

        if not self.force_materialize:
            # torch .view() on a contiguous tensor is metadata-only; so is a
            # row-major jnp.reshape in XLA.  Zero HBM traffic — the dominant
            # optimization on every TPU generation.
            return jnp.reshape(x, out_shape)

        itemsize = jnp.dtype(x.dtype).itemsize
        plan = _tile_plan(x.size, itemsize, _block_bytes_cap())
        if plan is None:
            # No clean lane-dense tiling (numel % 128 != 0, zero-size, or a
            # degenerate factorization): exact metadata reshape instead.
            return jnp.reshape(x, out_shape)

        rows, lanes, block_rows = plan
        x2d = jnp.reshape(x, (rows, lanes))     # metadata-only row-major flatten
        y2d = _pallas_copy_2d(x2d, block_rows, donate=self.donate)
        return jnp.reshape(y2d, out_shape)      # metadata-only final .view()


# ----------------------------------------------------------------------------
# Demo / smoke test.
# ----------------------------------------------------------------------------
if __name__ == "__main__":
    key = jax.random.PRNGKey(0)
    k0, k1 = jax.random.split(key)
    x = jax.random.normal(k0, (2, 4, 16, 16), dtype=jnp.float32)   # NCHW input

    # 1) Default path: metadata-only reshape, exactly like torch .view().
    y = jax.block_until_ready(Reshape(2, -1)(x))
    assert y.shape == (2, 1024) and y.dtype == x.dtype
    assert bool(jnp.all(y == jnp.reshape(x, (2, -1))))

    # 2) Forced-materialize Pallas path at the small spec shape
    #    (single full-extent lane-dense block).
    y_m = jax.block_until_ready(Reshape(2, -1, force_materialize=True)(x))
    assert y_m.shape == (2, 1024) and y_m.dtype == x.dtype
    assert bool(jnp.all(y_m == jnp.reshape(x, (2, -1))))

    # 3) Forced path, bf16 (dtype-aware sublane handling).
    xb = x.astype(jnp.bfloat16)
    yb = jax.block_until_ready(Reshape(8, -1, force_materialize=True)(xb))
    assert yb.shape == (8, 256) and yb.dtype == jnp.bfloat16
    assert bool(jnp.all(yb == jnp.reshape(xb, (8, -1))))

    # 4) Forced path, 2 MiB tensor: exercises the pipelined multi-step plan
    #    (>= 4 grid steps, lane-dense blocks, generation-capped VMEM budget).
    xg = jax.random.normal(k1, (8, 8, 128, 64), dtype=jnp.float32)
    yg = jax.block_until_ready(Reshape(64, -1, force_materialize=True)(xg))
    assert yg.shape == (64, 8192) and yg.dtype == xg.dtype
    assert bool(jnp.all(yg == jnp.reshape(xg, (64, -1))))

    print("KERNEL_OK")
</pallas_src>

<mosaic_0001>
module attributes {stable_mosaic.version = 11 : i64} {
  func.func @_copy_kernel(%arg0: i32, %arg1: memref<1x2048xf32, #tpu.memory_space<vmem>>, %arg2: memref<1x2048xf32, #tpu.memory_space<vmem>>) attributes {dimension_semantics = [#tpu.dimension_semantics<parallel>], iteration_bounds = array<i64: 1>, scalar_prefetch = 0 : i64, scratch_operands = 0 : i64, tpu.core_type = #tpu.core_type<tc>, window_params = [{transform_indices = @transform_0, window_bounds = array<i64: 1, 2048>}, {transform_indices = @transform_1, window_bounds = array<i64: 1, 2048>}]} {
    %c0 = arith.constant 0 : index
    %c0_0 = arith.constant 0 : index
    %0 = vector.load %arg1[%c0, %c0_0] : memref<1x2048xf32, #tpu.memory_space<vmem>>, vector<1x2048xf32>
    %c0_1 = arith.constant 0 : index
    %c0_2 = arith.constant 0 : index
    %1 = vector.load %arg2[%c0_1, %c0_2] : memref<1x2048xf32, #tpu.memory_space<vmem>>, vector<1x2048xf32>
    tpu.vector_store %arg2[%c0_1, %c0_2], %0 {strides = array<i32>} : memref<1x2048xf32, #tpu.memory_space<vmem>>, vector<1x2048xf32>,
    return
  }
  func.func @transform_0(%arg0: i32) -> (i32, i32) {
    %c0_i32 = arith.constant 0 : i32
    %c0_i32_0 = arith.constant 0 : i32
    return %arg0, %c0_i32 : i32, i32
  }
  func.func @transform_1(%arg0: i32) -> (i32, i32) {
    %c0_i32 = arith.constant 0 : i32
    %c0_i32_0 = arith.constant 0 : i32
    return %arg0, %c0_i32 : i32, i32
  }
}

</mosaic_0001>

<bundles_post_ra>
// kernel: tpu_custom_call.1
= control target key start
LH: loop header
LB: loop body
LE: loop exit
PB: predicated region body
PF: predicated region fallthrough
CT: control target
= control target key end

     0   :  { %6 = vsyncpa [#allocation3], 0  ;;  %s126_s0 = inlined_call_operand.hbm [shape: f32[1,2048], index: 0, kind: input, shape index: {}]   ;;  %s127_s1 = inlined_call_operand.hbm [shape: f32[1,2048], index: 1, kind: output, shape index: {}]  }
   0x1   :  { %7 = vsyncpa [#allocation4], 0  ;;  %s90_s6 = smov [#allocation2]   ;;  %s42_s10 = scalar_lea.hbm %s126_s0, 256 }
   0x2   :  { %s14_s7 = sshll.u32 %s90_s6, 4  ;;  %p43_p0 = scmp.ne.s32.totalorder %s126_s0, %s42_s10  ;;  %s15_s7 = int_to_ptr.vmem [resolvable:$true] %s14_s7 }
   0x3   :  { %p46_p1 = scmp.lt.u32.totalorder %s42_s10, %s126_s0 }
   0x5   :  { %p48_p2 = pnand %p46_p1, %p43_p0 }
   0x7   :  { %51 = shalt.err (!%p48_p2)
}
   0x8   :  { %s52_s15 = scalar_lea.vmem %s15_s7, 256  ;;  %p57_p4 = scmp.lt.s32.totalorder %s15_s7, %s15_s7 }
   0x9   :  { %p53_p3 = scmp.ne.s32.totalorder %s15_s7, %s52_s15  ;;  %p58_p5 = scmp.lt.s32.totalorder %s52_s15, %s52_s15 }
   0xb   :  { %p59_p6 = por %p58_p5, %p57_p4 }
   0xd   :  { %p60_p7 = pnand %p59_p6, %p53_p3 }
   0xf   :  { %63 = shalt.err (!%p60_p7)
}
  0x10   :  { %17 = dma.hbm_to_vmem [thread:$0]  %s126_s0, 256, %s15_s7, [#allocation3]  }
  0x11   :  { %86 = dma.done.wait [#allocation3], 256  }
  0x12   :  { %87 = vsyncadd [#allocation3], 4294967040  ;;  %s91_s18 = smov [#allocation5]   ;;  %v21_v0 = vld [vmem:[#allocation2] sm:$0xff]  ;;  %v22_v1 = vld [vmem:[#allocation2 + $0x8] sm:$0xff] }
  0x13   :  { %s31_s19 = sshll.u32 %s91_s18, 4  ;;  %23 = vst [vmem:[#allocation5] sm:$0xff] %v21_v0  ;;  %24 = vst [vmem:[#allocation5 + $0x8] sm:$0xff] %v22_v1  ;;  %s32_s19 = int_to_ptr.vmem [resolvable:$true] %s31_s19 }
  0x14   :  { %s64_s20 = scalar_lea.vmem %s32_s19, 256  ;;  %p69_p9 = scmp.lt.s32.totalorder %s32_s19, %s32_s19 }
  0x15   :  { %p65_p8 = scmp.ne.s32.totalorder %s32_s19, %s64_s20  ;;  %p70_p10 = scmp.lt.s32.totalorder %s64_s20, %s64_s20 }
  0x17   :  { %p71_p11 = por %p70_p10, %p69_p9 }
  0x19   :  { %p72_p12 = pnand %p71_p11, %p65_p8 }
  0x1b   :  { %75 = shalt.err (!%p72_p12)
}
  0x1c   :  { %s76_s0 = scalar_lea.hbm %s127_s1, 256 }
  0x1d   :  { %p77_p13 = scmp.ne.s32.totalorder %s127_s1, %s76_s0  ;;  %p80_p0 = scmp.lt.u32.totalorder %s76_s0, %s127_s1 }
  0x1f   :  { %p82_p1 = pnand %p80_p0, %p77_p13 }
  0x21   :  { %85 = shalt.err (!%p82_p1)
}
  0x22   :  { %34 = dma.vmem_to_hbm [thread:$0]  %s32_s19, 256, %s127_s1, [#allocation4]  }
  0x23   :  { %88 = dma.done.wait [#allocation4], 256  }
  0x24   :  { %89 = vsyncadd [#allocation4], 4294967040 }
  0x25   :  { %38 = vsyncpa [#allocation3], 1 }
  0x26   :  { %39 = vsyncpa [#allocation4], 1 }

</bundles_post_ra>
